<compile_context>
chip_gen: v7x
topology: tpu7x:2x2x1
jax: 0.10.0
libtpu: 0.0.40
codegen_flags: <defaults>
</compile_context>

<pallas_src>
import functools

import jax
import jax.numpy as jnp
from jax.experimental import pallas as pl
from jax.experimental.pallas import tpu as pltpu

IN_FEATURES = 2 * 128     # nn.Linear(2 * 128, 64)
HIDDEN = 64
HIDDEN_PAD = 128          # lane-dense padded hidden width
OUT_PAD = 128             # lane-dense padded output width (num_classes <= 128)
_MAX_TILE_B = 2048        # 2048x256 bf16 emb tile = 1 MiB; fits any gen's VMEM


def _round_up(x, m):
    return ((x + m - 1) // m) * m


def _batch_tiling(B):
    """Return (padded_B, tile_b): 8-aligned big tiles, even >=2-step grid if possible."""
    bp = _round_up(B, 8)
    if bp <= 8:
        return bp, bp                                   # single tiny tile
    n = max(2, (bp + _MAX_TILE_B - 1) // _MAX_TILE_B)   # >=2 steps for v7x megacore
    if n % 2:
        n += 1                                          # even grid -> both TCs busy
    tile_b = _round_up((bp + n - 1) // n, 8)
    return tile_b * n, tile_b


def _classifier_kernel(emb_ref, w1_ref, b_ref, w2_ref, out_ref):
    """pred = Linear2(sigmoid(Linear1(emb_flat))), fully fused, lane-dense padded."""
    emb = emb_ref[...]                                  # (tile_b, 256) bf16
    b = b_ref[...]                                      # (2, 128) f32 packed biases
    b1 = b[0:1, :]                                      # zeros past HIDDEN
    b2 = b[1:2, :]                                      # zeros past num_classes

    # Linear(256 -> 128-padded): bf16 operands on the MXU, f32 accumulate.
    h = jnp.dot(emb, w1_ref[...], preferred_element_type=jnp.float32) + b1
    h = jax.nn.sigmoid(h)                               # f32 sigmoid (EUP)
    # Padded hidden cols are sigmoid(0)=0.5 but the matching W2 rows are zero.
    out_ref[...] = jnp.dot(h, w2_ref[...], preferred_element_type=jnp.float32) + b2


@functools.partial(jax.jit, static_argnames=("num_classes",))
def target_classifier_forward(emb, w1_pad, b_packed, w2_pad, *, num_classes):
    """emb: (B, 2, 128) (or anything flattening to 256). Returns (B, num_classes) f32."""
    B = emb.shape[0]
    emb_flat = emb.reshape(B, -1).astype(jnp.bfloat16)  # halve the dominant HBM stream
    in_features = emb_flat.shape[1]

    padded_B, tile_b = _batch_tiling(B)
    if padded_B != B:
        emb_flat = jnp.pad(emb_flat, ((0, padded_B - B), (0, 0)))
    grid = (padded_B // tile_b,)

    cost = pl.CostEstimate(
        flops=2 * B * (in_features * HIDDEN + HIDDEN * num_classes),
        transcendentals=B * HIDDEN,                     # sigmoid
        bytes_accessed=(2 * padded_B * in_features      # bf16 emb in
                        + 2 * w1_pad.size + 4 * b_packed.size + 4 * w2_pad.size
                        + 4 * padded_B * OUT_PAD),      # f32 out
    )

    out = pl.pallas_call(
        _classifier_kernel,
        out_shape=jax.ShapeDtypeStruct((padded_B, OUT_PAD), jnp.float32),
        grid_spec=pltpu.PrefetchScalarGridSpec(
            num_scalar_prefetch=0,
            grid=grid,
            in_specs=[
                pl.BlockSpec((tile_b, in_features), lambda i: (i, 0)),      # emb tile
                pl.BlockSpec((in_features, HIDDEN_PAD), lambda i: (0, 0)),  # W1 resident
                pl.BlockSpec(b_packed.shape, lambda i: (0, 0)),             # packed biases
                pl.BlockSpec((HIDDEN_PAD, OUT_PAD), lambda i: (0, 0)),      # W2 resident
            ],
            out_specs=pl.BlockSpec((tile_b, OUT_PAD), lambda i: (i, 0)),
        ),
        compiler_params=pltpu.CompilerParams(
            dimension_semantics=("parallel",)),         # shard tiles across v7x's 2 TCs
        cost_estimate=cost,
    )(emb_flat, w1_pad, b_packed, w2_pad)

    return out[:B, :num_classes]


def init_classifier_params(key, in_features, hidden, num_classes):
    """PyTorch-style uniform(+-1/sqrt(fan_in)) init; returns padded kernel params
    plus the unpadded f32 originals for the reference check.

    Kernel layout: W1 (in, 128) bf16 (cols >= hidden zero), W2 (128, 128) f32
    (rows >= hidden and cols >= num_classes zero), biases packed as (2, 128) f32.
    """
    assert hidden <= HIDDEN_PAD and num_classes <= OUT_PAD, \
        "packed-bias / lane-padding contract: hidden <= 128 and num_classes <= 128"
    k1, k2, k3, k4 = jax.random.split(key, 4)
    bound1 = 1.0 / jnp.sqrt(jnp.float32(in_features))
    w1 = jax.random.uniform(k1, (in_features, hidden), jnp.float32, -bound1, bound1)
    b1 = jax.random.uniform(k2, (hidden,), jnp.float32, -bound1, bound1)
    bound2 = 1.0 / jnp.sqrt(jnp.float32(hidden))
    w2 = jax.random.uniform(k3, (hidden, num_classes), jnp.float32, -bound2, bound2)
    b2 = jax.random.uniform(k4, (num_classes,), jnp.float32, -bound2, bound2)

    w1_pad = jnp.zeros((in_features, HIDDEN_PAD), jnp.float32).at[:, :hidden].set(w1)
    w1_pad = w1_pad.astype(jnp.bfloat16)
    w2_pad = jnp.zeros((HIDDEN_PAD, OUT_PAD), jnp.float32)
    w2_pad = w2_pad.at[:hidden, :num_classes].set(w2)
    b_packed = jnp.zeros((2, HIDDEN_PAD), jnp.float32)
    b_packed = b_packed.at[0, :hidden].set(b1).at[1, :num_classes].set(b2)

    return (w1_pad, b_packed, w2_pad), (w1, b1, w2, b2)


if __name__ == "__main__":
    # Small shapes consistent with the module: emb (B, 2, 128) so emb.reshape(B, -1)
    # feeds nn.Linear(2*128, 64); num_classes_target = 8.
    B, NUM_CLASSES = 16, 8

    root = jax.random.PRNGKey(0)
    k_emb, k_params = jax.random.split(root)

    emb = jax.random.normal(k_emb, (B, 2, 128), jnp.float32)
    (w1_pad, b_packed, w2_pad), (w1, b1, w2, b2) = init_classifier_params(
        k_params, IN_FEATURES, HIDDEN, NUM_CLASSES)

    pred = jax.block_until_ready(
        target_classifier_forward(emb, w1_pad, b_packed, w2_pad,
                                  num_classes=NUM_CLASSES))

    # Pure-JAX f32 reference (bf16 matmul operands give small, bounded deviation).
    emb_flat = emb.reshape(B, -1)
    ref = jax.nn.sigmoid(emb_flat @ w1 + b1) @ w2 + b2

    assert pred.shape == (B, NUM_CLASSES)
    assert bool(jnp.all(jnp.isfinite(pred)))
    assert bool(jnp.allclose(pred, ref, atol=2e-2, rtol=2e-2)), \
        ("max abs err", float(jnp.max(jnp.abs(pred - ref))))
    print("KERNEL_OK")
</pallas_src>

<mosaic_0001>
module attributes {stable_mosaic.version = 11 : i64} {
  func.func @_classifier_kernel(%arg0: i32, %arg1: memref<8x256xbf16, #tpu.memory_space<vmem>>, %arg2: memref<256x128xbf16, #tpu.memory_space<vmem>>, %arg3: memref<2x128xf32, #tpu.memory_space<vmem>>, %arg4: memref<128x128xf32, #tpu.memory_space<vmem>>, %arg5: memref<8x128xf32, #tpu.memory_space<vmem>>) attributes {dimension_semantics = [#tpu.dimension_semantics<parallel>], iteration_bounds = array<i64: 2>, scalar_prefetch = 0 : i64, scratch_operands = 0 : i64, tpu.core_type = #tpu.core_type<tc>, window_params = [{transform_indices = @transform_0, window_bounds = array<i64: 8, 256>}, {pipeline_mode = #tpu.pipeline_mode<synchronous>, transform_indices = @transform_1, window_bounds = array<i64: 256, 128>}, {pipeline_mode = #tpu.pipeline_mode<synchronous>, transform_indices = @transform_2, window_bounds = array<i64: 2, 128>}, {pipeline_mode = #tpu.pipeline_mode<synchronous>, transform_indices = @transform_3, window_bounds = array<i64: 128, 128>}, {transform_indices = @transform_4, window_bounds = array<i64: 8, 128>}]} {
    %c0 = arith.constant 0 : index
    %c0_0 = arith.constant 0 : index
    %0 = vector.load %arg1[%c0, %c0_0] : memref<8x256xbf16, #tpu.memory_space<vmem>>, vector<8x256xbf16>
    %c0_1 = arith.constant 0 : index
    %c0_2 = arith.constant 0 : index
    %1 = vector.load %arg3[%c0_1, %c0_2] : memref<2x128xf32, #tpu.memory_space<vmem>>, vector<2x128xf32>
    %2 = vector.extract_strided_slice %1 {offsets = [0, 0], sizes = [1, 128], strides = [1, 1]} : vector<2x128xf32> to vector<1x128xf32>
    %3 = vector.extract_strided_slice %1 {offsets = [1, 0], sizes = [1, 128], strides = [1, 1]} : vector<2x128xf32> to vector<1x128xf32>
    %c0_3 = arith.constant 0 : index
    %c0_4 = arith.constant 0 : index
    %4 = vector.load %arg2[%c0_3, %c0_4] : memref<256x128xbf16, #tpu.memory_space<vmem>>, vector<256x128xbf16>
    %cst = arith.constant dense<0.000000e+00> : vector<8x128xf32>
    %5 = tpu.matmul %0, %4, %cst {dimension_numbers = #tpu.dot_dimension_numbers<[1], [0], [0], [1], [0, 0, 1, 1], [], []>} : vector<8x256xbf16>, vector<256x128xbf16>, vector<8x128xf32> -> vector<8x128xf32>
    %6 = vector.broadcast %2 : vector<1x128xf32> to vector<8x128xf32>
    %7 = arith.addf %5, %6 : vector<8x128xf32>
    %8 = arith.negf %7 : vector<8x128xf32>
    %9 = math.exp %8 : vector<8x128xf32>
    %cst_5 = arith.constant 1.000000e+00 : f32
    %10 = vector.broadcast %cst_5 : f32 to vector<8x128xf32>
    %11 = arith.addf %10, %9 : vector<8x128xf32>
    %12 = arith.divf %10, %11 : vector<8x128xf32>
    %c0_6 = arith.constant 0 : index
    %c0_7 = arith.constant 0 : index
    %13 = vector.load %arg4[%c0_6, %c0_7] : memref<128x128xf32, #tpu.memory_space<vmem>>, vector<128x128xf32>
    %cst_8 = arith.constant dense<0.000000e+00> : vector<8x128xf32>
    %14 = tpu.matmul %12, %13, %cst_8 {dimension_numbers = #tpu.dot_dimension_numbers<[1], [0], [0], [1], [0, 0, 1, 1], [], []>} : vector<8x128xf32>, vector<128x128xf32>, vector<8x128xf32> -> vector<8x128xf32>
    %15 = vector.broadcast %3 : vector<1x128xf32> to vector<8x128xf32>
    %16 = arith.addf %14, %15 : vector<8x128xf32>
    %c0_9 = arith.constant 0 : index
    %c0_10 = arith.constant 0 : index
    %17 = vector.load %arg5[%c0_9, %c0_10] : memref<8x128xf32, #tpu.memory_space<vmem>>, vector<8x128xf32>
    tpu.vector_store %arg5[%c0_9, %c0_10], %16 {strides = array<i32>} : memref<8x128xf32, #tpu.memory_space<vmem>>, vector<8x128xf32>,
    return
  }
  func.func @transform_0(%arg0: i32) -> (i32, i32) {
    %c0_i32 = arith.constant 0 : i32
    %c0_i32_0 = arith.constant 0 : i32
    return %arg0, %c0_i32 : i32, i32
  }
  func.func @transform_1(%arg0: i32) -> (i32, i32) {
    %c0_i32 = arith.constant 0 : i32
    %c0_i32_0 = arith.constant 0 : i32
    %c0_i32_1 = arith.constant 0 : i32
    return %c0_i32, %c0_i32_0 : i32, i32
  }
  func.func @transform_2(%arg0: i32) -> (i32, i32) {
    %c0_i32 = arith.constant 0 : i32
    %c0_i32_0 = arith.constant 0 : i32
    %c0_i32_1 = arith.constant 0 : i32
    return %c0_i32, %c0_i32_0 : i32, i32
  }
  func.func @transform_3(%arg0: i32) -> (i32, i32) {
    %c0_i32 = arith.constant 0 : i32
    %c0_i32_0 = arith.constant 0 : i32
    %c0_i32_1 = arith.constant 0 : i32
    return %c0_i32, %c0_i32_0 : i32, i32
  }
  func.func @transform_4(%arg0: i32) -> (i32, i32) {
    %c0_i32 = arith.constant 0 : i32
    %c0_i32_0 = arith.constant 0 : i32
    return %arg0, %c0_i32 : i32, i32
  }
}

</mosaic_0001>

<bundles_post_ra>
// kernel: target_classifier_forward.1
= control target key start
LH: loop header
LB: loop body
LE: loop exit
PB: predicated region body
PF: predicated region fallthrough
CT: control target
= control target key end

     0   :  { %9 = vsyncpa [#allocation3], 0  ;;  %s979_s0 = inlined_call_operand.vmem [shape: bf16[16,256], index: 0, kind: input, shape index: {}]   ;;  %s980_s1 = inlined_call_operand.hbm [shape: bf16[256,128], index: 1, kind: input, shape index: {}]   ;;  %s981_s2 = inlined_call_operand.vmem [shape: f32[2,128], index: 2, kind: input, shape index: {}]   ;;  %s982_s3 = inlined_call_operand.hbm [shape: f32[128,128], index: 3, kind: input, shape index: {}]   ;;  %s983_s4 = inlined_call_operand.vmem [shape: f32[16,128], index: 4, kind: output, shape index: {}]  }
   0x1   :  { %10 = vsyncpa [#allocation5], 0  ;;  %s876_s15 = smov 0  }
   0x2 LB: > { %s842_s16 = smov [#allocation2]   ;;  %s882_s18 = sadd.s32 4294967295, %s840_s15   ;;  %s840_s15 = sphi %s876_s15, %s16_s15  }
   0x3   : > { %s148_s17 = sshll.u32 %s842_s16, 4  ;;  %p582_p0 = scmp.ge.s32.totalorder %s840_s15, 1  ;;  %s149_s17 = int_to_ptr.vmem [resolvable:$true] %s148_s17 }
   0x4   : > { %p136_p1 = scmp.lt.s32.totalorder %s840_s15, 3  ;;  %p984_p3 = scmp.eq.s32.totalorder %s882_s18, 0 }
   0x5   : > { %s843_s20 = smov [#allocation4]   ;;  %s770_s25 = scalar_lea.hbm %s980_s1, 2048 }
   0x6   : > { %p886_p2 = pnand %p582_p0, %p136_p1  ;;  %s164_s21 = sshll.u32 %s843_s20, 4  ;;  %s899_s21 = int_to_ptr.vmem [resolvable:$true] %s164_s21 }
   0x7   : > { %p771_p6 = scmp.ne.s32.totalorder %s980_s1, %s770_s25  ;;  %p777_p10 = scmp.lt.u32.totalorder %s770_s25, %s980_s1 }
   0x8   : > { %s986_s19 = scalar_select %p886_p2, 1, 0 }
   0x9   : > { %p720_p4 = pneg %p886_p2 }
   0xb   : > { %p895_p5 = pnand %p984_p3, %p720_p4 }
   0xd   : > { %p772_p7 = pneg %p895_p5 }
   0xf   : > { %p773_p8 = pnand %p772_p7, %p771_p6 }
  0x11   : > { %p774_p9 = pneg %p773_p8 }
  0x13   : > { %p779_p11 = pnand %p777_p10, %p774_p9 }
  0x15   : > { %782 = shalt.err (!%p779_p11)
}
  0x16   : > { %s783_s30 = scalar_lea.vmem %s149_s17, 2048  ;;  %p791_p1 = scmp.lt.s32.totalorder %s149_s17, %s149_s17 }
  0x17   : > { %p784_p12 = scmp.ne.s32.totalorder %s149_s17, %s783_s30  ;;  %p792_p4 = scmp.lt.s32.totalorder %s783_s30, %s783_s30 }
  0x19   : > { %p786_p13 = pnand %p784_p12, %p772_p7  ;;  %p793_p3 = por %p792_p4, %p791_p1 }
  0x1b   : > { %p787_p0 = pneg %p786_p13 }
  0x1d   : > { %p794_p2 = pnand %p793_p3, %p787_p0 }
  0x1f   : > { %797 = shalt.err (!%p794_p2)
}
  0x20   : > { %s844_s5 = smov 64   ;;  %s845_s6 = smov 4  }
  0x21   : > { %723 = dma.hbm_to_vmem [thread:$0]  (!%p895_p5), %s980_s1, 2048, %s149_s17, [#allocation3], %s844_s5, %s844_s5, %s845_s6  }
  0x22   : > { %s798_s11 = scalar_lea.hbm %s982_s3, 2048 }
  0x23   : > { %p799_p6 = scmp.ne.s32.totalorder %s982_s3, %s798_s11  ;;  %p805_p8 = scmp.lt.u32.totalorder %s798_s11, %s982_s3 }
  0x25   : > { %p801_p2 = pnand %p799_p6, %p772_p7 }
  0x27   : > { %p802_p3 = pneg %p801_p2 }
  0x29   : > { %p807_p9 = pnand %p805_p8, %p802_p3 }
  0x2b   : > { %810 = shalt.err (!%p807_p9)
}
  0x2c   : > { %s811_s17 = scalar_lea.vmem %s899_s21, 2048  ;;  %p819_p13 = scmp.lt.s32.totalorder %s899_s21, %s899_s21 }
  0x2d   : > { %p812_p10 = scmp.ne.s32.totalorder %s899_s21, %s811_s17  ;;  %p820_p0 = scmp.lt.s32.totalorder %s811_s17, %s811_s17 }
  0x2f   : > { %p814_p11 = pnand %p812_p10, %p772_p7  ;;  %p821_p1 = por %p820_p0, %p819_p13 }
  0x31   : > { %p815_p12 = pneg %p814_p11 }
  0x33   : > { %p822_p4 = pnand %p821_p1, %p815_p12 }
  0x35   : > { %825 = shalt.err (!%p822_p4)
}
  0x36   : > { %s846_s20 = smov 128   ;;  %s847_s23 = smov 8  }
  0x37   : > { %726 = dma.hbm_to_vmem [thread:$0]  (!%p895_p5), %s982_s3, 2048, %s899_s21, [#allocation5], %s846_s20, %s846_s20, %s847_s23  }
  0x38   : > { %p988_p6 = scmp.ne.s32.totalorder %s986_s19, 0 }
  0x39   : > { %p989_p7 = scmp.eq.s32.totalorder (!%p988_p6), %s882_s18, 0 }
  0x3a   : > { %188 = sbr.rel (%p988_p6) target bundleno = 561 (0x231), region = 36 }
  0x41   : > { %831 = dma.done.wait (%p989_p7), [#allocation3], 2048   ;;  %p990_p2 = pmov %p989_p7 }
  0x43   : > { %833 = vsyncadd (%p990_p2), [#allocation3], 4294965248  ;;  %p991_p3 = pmov %p990_p2 }
  0x44   : > { %p992_p8 = pmov %p990_p2 }
  0x45   : > { %835 = dma.done.wait (%p991_p3), [#allocation5], 2048  }
  0x46   : > { %837 = vsyncadd (%p992_p8), [#allocation5], 4294965248  ;;  %v748_v0 = vld [vmem:[#allocation2 + $0x40] sm:$0xff]   ;;  %v750_v2 = vld [vmem:[#allocation2 + $0x48] sm:$0xff]   ;;  %p217_p5 = scmp.lt.s32.totalorder %s882_s18, 1  ;;  %v848_v22 = vmov 0.0|0.0   ;;  %v261_v45 = vlaneseq }
  0x47   : > { %v749_v1 = vld [vmem:[#allocation2] sm:$0xff]   ;;  %614 = vmatprep.subr.bf16.mxu0 %v748_v0  ;;  %v751_v3 = vld [vmem:[#allocation2 + $0x8] sm:$0xff]   ;;  %v752_v4 = vld [vmem:[#allocation2 + $0x50] sm:$0xff]   ;;  %688 = vmatprep.subr.bf16.mxu1 %v848_v22  ;;  %vm849_vm0 = vmmov 0   ;;  %v850_v43 = vmov 0.0  }
  0x48   : > { %615 = vmatpush3.bf16.msra.mxu0 %v749_v1  ;;  %s994_s18 = smov (!%p217_p5, %s882_s18), 1  ;;  %v753_v5 = vld [vmem:[#allocation2 + $0x10] sm:$0xff]   ;;  %v754_v6 = vld [vmem:[#allocation2 + $0x58] sm:$0xff]   ;;  %v756_v8 = vld [vmem:[#allocation2 + $0x60] sm:$0xff]   ;;  %685 = vmatprep.mubr.msk.f32.mxu1 %vm849_vm0, %v850_v43  ;;  %v262_v46 = vshrl.u32 %v261_v45, 7 }
  0x49   : > { %616 = vmatprep.subr.bf16.mxu0 %v750_v2  ;;  %s613_s19 = sshll.u32 %s994_s18, 3  ;;  %v755_v7 = vld [vmem:[#allocation2 + $0x18] sm:$0xff]   ;;  %v757_v9 = vld [vmem:[#allocation2 + $0x20] sm:$0xff]   ;;  %v758_v10 = vld [vmem:[#allocation2 + $0x68] sm:$0xff]  }
  0x4a   : > { %s221_s26 = scalar_lea.vmem %s979_s0, %s613_s19  ;;  %v759_v13 = vld [vmem:[#allocation2 + $0x28] sm:$0xff]   ;;  %v760_v14 = vld [vmem:[#allocation2 + $0x70] sm:$0xff]   ;;  %v762_v16 = vld [vmem:[#allocation2 + $0x78] sm:$0xff]   ;;  %v432_v47 = vsub.s32 1, %v262_v46  ;;  %v263_v50 = vsub.s32 0, %v262_v46  ;;  %s225_s5 = scalar_lea.vmem %s983_s4, %s613_s19 }
  0x4b   : > { %v227_v11 = vld [vmem:[%s221_s26] sm:$0xff]  ;;  %v761_v15 = vld [vmem:[#allocation2 + $0x30] sm:$0xff]   ;;  %v763_v17 = vld [vmem:[#allocation2 + $0x38] sm:$0xff]  }
  0x4c   : > { %617 = vmatpush3.bf16.msra.mxu0 %v751_v3  ;;  %v593_v12 = vcombine.high %v227_v11, %v227_v11  ;;  %v592_v18 = vcombine.low %v227_v11, %v227_v11  ;;  %v414_v19 = vld [vmem:[#allocation4] sm:$0xff]  ;;  %v415_v20 = vld [vmem:[#allocation4 + $0x8] sm:$0xff]  ;;  %v416_v23 = vld [vmem:[#allocation4 + $0x10] sm:$0xff] }
  0x4d   : > { %618 = vmatprep.subr.bf16.mxu0 %v752_v4  ;;  %v689_v21 = vpack.c.bf16 %v415_v20, %v414_v19  ;;  %v417_v24 = vld [vmem:[#allocation4 + $0x18] sm:$0xff]  ;;  %v418_v26 = vld [vmem:[#allocation4 + $0x20] sm:$0xff]  ;;  %v419_v27 = vld [vmem:[#allocation4 + $0x28] sm:$0xff] }
  0x4e   : > { %400 = vmatprep.mubr.bf16.mxu0 %v593_v12  ;;  %v692_v25 = vpack.c.bf16 %v417_v24, %v416_v23  ;;  %v695_v28 = vpack.c.bf16 %v419_v27, %v418_v26  ;;  %v420_v29 = vld [vmem:[#allocation4 + $0x30] sm:$0xff]  ;;  %v421_v30 = vld [vmem:[#allocation4 + $0x38] sm:$0xff]  ;;  %v422_v32 = vld [vmem:[#allocation4 + $0x40] sm:$0xff] }
  0x4f   : > { %690 = vmatpush3.bf16.msra.mxu1 %v689_v21  ;;  %v698_v31 = vpack.c.bf16 %v421_v30, %v420_v29  ;;  %v423_v33 = vld [vmem:[#allocation4 + $0x48] sm:$0xff]  ;;  %v424_v35 = vld [vmem:[#allocation4 + $0x50] sm:$0xff]  ;;  %v425_v36 = vld [vmem:[#allocation4 + $0x58] sm:$0xff] }
  0x50   : > { %619 = vmatpush3.bf16.msra.mxu0 %v753_v5  ;;  %691 = vmatprep.subr.bf16.mxu1 %v848_v22  ;;  %v701_v34 = vpack.c.bf16 %v423_v33, %v422_v32  ;;  %v704_v37 = vpack.c.bf16 %v425_v36, %v424_v35  ;;  %v426_v38 = vld [vmem:[#allocation4 + $0x60] sm:$0xff]  ;;  %v427_v39 = vld [vmem:[#allocation4 + $0x68] sm:$0xff]  ;;  %v428_v41 = vld [vmem:[#allocation4 + $0x70] sm:$0xff] }
  0x51   : > { %620 = vmatprep.subr.bf16.mxu0 %v754_v6  ;;  %v707_v40 = vpack.c.bf16 %v427_v39, %v426_v38  ;;  %v429_v42 = vld [vmem:[#allocation4 + $0x78] sm:$0xff]  ;;  %v228_v48 = vld [vmem:[%s981_s2] sm:$0x3] }
  0x52   : > { %v710_v44 = vpack.c.bf16 %v429_v42, %v428_v41  ;;  %v433_v49 = vrot.slane %v228_v48, %v432_v47  ;;  %v264_v52 = vrot.slane %v228_v48, %v263_v50 }
  0x53   : > { %693 = vmatpush3.bf16.msra.mxu1 %v692_v25 }
  0x54   : > { %621 = vmatpush3.bf16.msra.mxu0 %v755_v7  ;;  %694 = vmatprep.subr.bf16.mxu1 %v848_v22 }
  0x55   : > { %622 = vmatprep.subr.bf16.mxu0 %v756_v8 }
  0x57   : > { %696 = vmatpush3.bf16.msra.mxu1 %v695_v28 }
  0x58   : > { %623 = vmatpush3.bf16.msra.mxu0 %v757_v9  ;;  %697 = vmatprep.subr.bf16.mxu1 %v848_v22 }
  0x59   : > { %624 = vmatprep.subr.bf16.mxu0 %v758_v10 }
  0x5b   : > { %699 = vmatpush3.bf16.msra.mxu1 %v698_v31 }
  0x5c   : > { %625 = vmatpush3.bf16.msra.mxu0 %v759_v13  ;;  %700 = vmatprep.subr.bf16.mxu1 %v848_v22 }
  0x5d   : > { %626 = vmatprep.subr.bf16.mxu0 %v760_v14 }
  0x5f   : > { %702 = vmatpush3.bf16.msra.mxu1 %v701_v34 }
  0x60   : > { %627 = vmatpush3.bf16.msra.mxu0 %v761_v15  ;;  %703 = vmatprep.subr.bf16.mxu1 %v848_v22 }
  0x61   : > { %628 = vmatprep.subr.bf16.mxu0 %v762_v16 }
  0x63   : > { %705 = vmatpush3.bf16.msra.mxu1 %v704_v37 }
  0x64   : > { %629 = vmatpush3.bf16.msra.mxu0 %v763_v17  ;;  %706 = vmatprep.subr.bf16.mxu1 %v848_v22 }
  0x67   : > { %401 = vmatmul.mubr.bf16.vlgmr.msra.gmra.mrb[0].mxu0 %v592_v18  ;;  %708 = vmatpush3.bf16.msra.mxu1 %v707_v40 }
  0x68   : > { %709 = vmatprep.subr.bf16.mxu1 %v848_v22 }
  0x6b   : > { %711 = vmatpush3.bf16.msra.mxu1 %v710_v44 }
 0x13a   : > { %v630_v51 = vpop.f32.mrb[0].mxu0 }
 0x13b   : > { %v631_v53 = vpop.f32.mrb[1].mxu0 }
 0x13c   : > { %v632_v54 = vadd.f32 %v631_v53, %v630_v51  ;;  %v633_v55 = vpop.f32.mrb[2].mxu0 }
 0x13d   : > { %v634_v56 = vpop.f32.mrb[3].mxu0 }
 0x13e   : > { %v403_v57 = vadd.f32 %v632_v54, %v264_v52 }
 0x140   : > { %v610_v58 = vmul.f32 -1.442695, %v403_v57 }
 0x142   : > { %766 = vpow2.f32 %v610_v58 }
 0x14c   : > { %v767_v59 = vpop.eup %766 }
 0x14d   : > { %v411_v60 = vadd.f32 1.0, %v767_v59 }
 0x14f   : > { %768 = vrcp.f32 %v411_v60 }
 0x159   : > { %v769_v61 = vpop.eup %768 }
 0x15a   : > { %686 = vmatmul.mubr.f32.vlgmr.msra.gmra.mrb[0].mxu1 %v769_v61 }
 0x22d   : > { %v500_v62 = vpop.f32.mrb[0].mxu1 }
 0x22e   : > { %v501_v63 = vadd.f32 %v500_v62, %v433_v49  ;;  %v687_v0 = vpop.f32.mrb[1].mxu1 }
 0x230   : > { %504 = vst [vmem:[%s225_s5] sm:$0xff] %v501_v63 }
 0x231 PF: > { %s16_s15 = sadd.s32 1, %s840_s15  }
 0x232   : > { %p13_p9 = scmp.ge.s32.totalorder %s16_s15, 4  }
 0x234   :  { %15 = sbr.rel (!%p13_p9) target bundleno = 2 (0x2), region = 75 }
 0x23b   :  { %524 = vsyncpa [#allocation3], 1 }
 0x23c   :  { %526 = vsyncpa [#allocation3 + $0x1], 1 }
 0x23d   :  { %527 = vsyncpa [#allocation5], 1 }

</bundles_post_ra>
